<compile_context>
chip_gen: v5e
topology: v5e:2x2
jax: 0.10.0
libtpu: 0.0.40
codegen_flags: <defaults>
</compile_context>

<pallas_src>
import functools

import jax
import jax.numpy as jnp
from jax import lax
from jax.experimental import pallas as pl
from jax.experimental.pallas import tpu as pltpu


def dqn_kernel(x_ref, w1_ref, w2_ref, b2_ref, out_ref):
    # fc1 (+ folded b1): (H, K) x (TB, K), contracting K on both -> (H, TB).
    h = lax.dot_general(
        w1_ref[...], x_ref[...],
        dimension_numbers=(((1,), (1,)), ((), ())),
        preferred_element_type=jnp.float32)
    h = jnp.maximum(h, 0.0)                       # ReLU in f32 on the VPU.
    # fc2: (A, H) x (H, TB) -> (A, TB), f32 accumulate.
    a = jnp.dot(w2_ref[...], h.astype(w2_ref.dtype),
                preferred_element_type=jnp.float32)
    # Lane-dense store: output last dim is the batch tile TB, not n_actions.
    out_ref[...] = (a + b2_ref[...]).astype(out_ref.dtype)


def prepare_params(w1, b1, w2, b2, matmul_dtype=jnp.float32):
    """One-time (per optimizer step) layout plumbing, hoisted out of forward().

    w1: (D_in, H), b1: (1, H), w2: (H, A), b2: (1, A)  (math layout)
    Returns:
      w1_aug: (H, D_in + 1)  fc1 weights transposed, b1 folded as last column
      w2T:    (A, H)
      b2T:    (A, 1) f32
    """
    D_in, H = w1.shape
    A = w2.shape[1]
    w1_aug = jnp.concatenate(
        [w1.T.astype(matmul_dtype), b1.reshape(H, 1).astype(matmul_dtype)],
        axis=1)                                        # (H, D_in + 1)
    w2T = w2.T.astype(matmul_dtype)                    # (A, H)
    b2T = b2.reshape(A, 1).astype(jnp.float32)         # (A, 1)
    return w1_aug, w2T, b2T


@functools.partial(jax.jit, static_argnames=("tb_max",))
def linear_dqn_forward(state, w1_aug, w2T, b2T, *, tb_max=512):
    """fc2(relu(fc1(state))) -> (B, A), matching the PyTorch forward."""
    B, D_in = state.shape
    H, Kb = w1_aug.shape                 # Kb = D_in + 1 (bias column folded)
    A = w2T.shape[0]
    assert Kb == D_in + 1

    # Batch tiling: a single lane-multiple tile covering the whole batch when
    # it fits (one grid step); 512-wide tiles for large replay batches.
    lane = 128
    bp_min = pl.cdiv(B, lane) * lane
    tb = min(tb_max, bp_min)
    n_tiles = pl.cdiv(bp_min, tb)
    Bp = n_tiles * tb

    # Append the constant-1 bias column and pad the batch. These fuse inside
    # this jit; padded rows are sliced off before returning.
    x_aug = jnp.concatenate(
        [state.astype(w1_aug.dtype), jnp.ones((B, 1), w1_aug.dtype)], axis=1)
    if Bp != B:
        x_aug = jnp.pad(x_aug, ((0, Bp - B), (0, 0)))

    outT = pl.pallas_call(
        dqn_kernel,
        out_shape=jax.ShapeDtypeStruct((A, Bp), jnp.float32),
        grid=(n_tiles,),
        in_specs=[
            # Batch tile of (state | 1) streams through VMEM (double-buffered).
            pl.BlockSpec((tb, Kb), lambda i: (i, 0)),
            # Weights / bias: constant index_map -> DMA'd once, VMEM-resident.
            pl.BlockSpec((H, Kb), lambda i: (0, 0)),
            pl.BlockSpec((A, H), lambda i: (0, 0)),
            pl.BlockSpec((A, 1), lambda i: (0, 0)),
        ],
        out_specs=pl.BlockSpec((A, tb), lambda i: (0, i)),
        compiler_params=pltpu.CompilerParams(
            dimension_semantics=("parallel",)),
    )(x_aug, w1_aug, w2T, b2T)

    # Back to the PyTorch-facing (B, A) layout, dropping batch padding.
    return outT.T[:B]


def init_params(key, input_dims, hidden, n_actions):
    """Deterministic init mimicking PyTorch nn.Linear (uniform +/- 1/sqrt(fan_in))."""
    k1, k2, k3, k4 = jax.random.split(key, 4)
    bound1 = 1.0 / jnp.sqrt(float(input_dims))
    bound2 = 1.0 / jnp.sqrt(float(hidden))
    w1 = jax.random.uniform(k1, (input_dims, hidden), jnp.float32, -bound1, bound1)
    b1 = jax.random.uniform(k2, (1, hidden), jnp.float32, -bound1, bound1)
    w2 = jax.random.uniform(k3, (hidden, n_actions), jnp.float32, -bound2, bound2)
    b2 = jax.random.uniform(k4, (1, n_actions), jnp.float32, -bound2, bound2)
    return w1, b1, w2, b2


if __name__ == "__main__":
    # CartPole-v1 network: observation dim 4 -> hidden 128 -> 2 actions.
    input_dims, hidden, n_actions = 4, 128, 2
    batch = 256  # replay-batch sized; runs as a single 256-wide grid step.

    key = jax.random.PRNGKey(0)
    k_state, k_params = jax.random.split(key)

    state = jax.random.normal(k_state, (batch, input_dims), dtype=jnp.float32)
    w1, b1, w2, b2 = init_params(k_params, input_dims, hidden, n_actions)

    # One-time parameter layout prep (re-run only after an optimizer step).
    params = prepare_params(w1, b1, w2, b2)

    actions = jax.block_until_ready(linear_dqn_forward(state, *params))

    # Plain-JAX f32 reference of the PyTorch forward.
    def ref_forward(x):
        h = jnp.maximum(jnp.dot(x, w1) + b1, 0.0)
        return jnp.dot(h, w2) + b2

    ref = ref_forward(state)
    assert actions.shape == (batch, n_actions)
    assert jnp.allclose(actions, ref, atol=2e-3, rtol=2e-3)

    # Tiny single-env-step style batch still works (padded to one tile).
    small_state = state[:2]
    small_actions = jax.block_until_ready(
        linear_dqn_forward(small_state, *params))
    assert small_actions.shape == (2, n_actions)
    assert jnp.allclose(small_actions, ref_forward(small_state),
                        atol=2e-3, rtol=2e-3)

    print("KERNEL_OK")
</pallas_src>

<mosaic_0001>
module attributes {stable_mosaic.version = 11 : i64} {
  func.func @dqn_kernel(%arg0: i32, %arg1: memref<256x5xf32, #tpu.memory_space<vmem>>, %arg2: memref<128x5xf32, #tpu.memory_space<vmem>>, %arg3: memref<2x128xf32, #tpu.memory_space<vmem>>, %arg4: memref<2x1xf32, #tpu.memory_space<vmem>>, %arg5: memref<2x256xf32, #tpu.memory_space<vmem>>) attributes {dimension_semantics = [#tpu.dimension_semantics<parallel>], iteration_bounds = array<i64: 1>, scalar_prefetch = 0 : i64, scratch_operands = 0 : i64, tpu.core_type = #tpu.core_type<tc>, window_params = [{transform_indices = @transform_0, window_bounds = array<i64: 256, 5>}, {pipeline_mode = #tpu.pipeline_mode<synchronous>, transform_indices = @transform_1, window_bounds = array<i64: 128, 5>}, {pipeline_mode = #tpu.pipeline_mode<synchronous>, transform_indices = @transform_2, window_bounds = array<i64: 2, 128>}, {pipeline_mode = #tpu.pipeline_mode<synchronous>, transform_indices = @transform_3, window_bounds = array<i64: 2, 1>}, {transform_indices = @transform_4, window_bounds = array<i64: 2, 256>}]} {
    %c0 = arith.constant 0 : index
    %c0_0 = arith.constant 0 : index
    %0 = vector.load %arg2[%c0, %c0_0] : memref<128x5xf32, #tpu.memory_space<vmem>>, vector<128x5xf32>
    %c0_1 = arith.constant 0 : index
    %c0_2 = arith.constant 0 : index
    %1 = vector.load %arg1[%c0_1, %c0_2] : memref<256x5xf32, #tpu.memory_space<vmem>>, vector<256x5xf32>
    %cst = arith.constant dense<0.000000e+00> : vector<128x256xf32>
    %2 = tpu.matmul %0, %1, %cst {dimension_numbers = #tpu.dot_dimension_numbers<[1], [1], [0], [0], [0, 0, 1, 0], [], []>} : vector<128x5xf32>, vector<256x5xf32>, vector<128x256xf32> -> vector<128x256xf32>
    %cst_3 = arith.constant 0.000000e+00 : f32
    %3 = vector.broadcast %cst_3 : f32 to vector<128x256xf32>
    %4 = arith.maximumf %2, %3 : vector<128x256xf32>
    %c0_4 = arith.constant 0 : index
    %c0_5 = arith.constant 0 : index
    %5 = vector.load %arg3[%c0_4, %c0_5] : memref<2x128xf32, #tpu.memory_space<vmem>>, vector<2x128xf32>
    %cst_6 = arith.constant dense<0.000000e+00> : vector<2x256xf32>
    %6 = tpu.matmul %5, %4, %cst_6 {dimension_numbers = #tpu.dot_dimension_numbers<[1], [0], [0], [1], [0, 0, 1, 1], [], []>} : vector<2x128xf32>, vector<128x256xf32>, vector<2x256xf32> -> vector<2x256xf32>
    %c0_7 = arith.constant 0 : index
    %c0_8 = arith.constant 0 : index
    %7 = vector.load %arg4[%c0_7, %c0_8] : memref<2x1xf32, #tpu.memory_space<vmem>>, vector<2x1xf32>
    %8 = vector.broadcast %7 : vector<2x1xf32> to vector<2x256xf32>
    %9 = arith.addf %6, %8 : vector<2x256xf32>
    %c0_9 = arith.constant 0 : index
    %c0_10 = arith.constant 0 : index
    %10 = vector.load %arg5[%c0_9, %c0_10] : memref<2x256xf32, #tpu.memory_space<vmem>>, vector<2x256xf32>
    tpu.vector_store %arg5[%c0_9, %c0_10], %9 {strides = array<i32>} : memref<2x256xf32, #tpu.memory_space<vmem>>, vector<2x256xf32>,
    return
  }
  func.func @transform_0(%arg0: i32) -> (i32, i32) {
    %c0_i32 = arith.constant 0 : i32
    %c0_i32_0 = arith.constant 0 : i32
    return %arg0, %c0_i32 : i32, i32
  }
  func.func @transform_1(%arg0: i32) -> (i32, i32) {
    %c0_i32 = arith.constant 0 : i32
    %c0_i32_0 = arith.constant 0 : i32
    %c0_i32_1 = arith.constant 0 : i32
    return %c0_i32, %c0_i32_0 : i32, i32
  }
  func.func @transform_2(%arg0: i32) -> (i32, i32) {
    %c0_i32 = arith.constant 0 : i32
    %c0_i32_0 = arith.constant 0 : i32
    %c0_i32_1 = arith.constant 0 : i32
    return %c0_i32, %c0_i32_0 : i32, i32
  }
  func.func @transform_3(%arg0: i32) -> (i32, i32) {
    %c0_i32 = arith.constant 0 : i32
    %c0_i32_0 = arith.constant 0 : i32
    %c0_i32_1 = arith.constant 0 : i32
    return %c0_i32, %c0_i32_0 : i32, i32
  }
  func.func @transform_4(%arg0: i32) -> (i32, i32) {
    %c0_i32 = arith.constant 0 : i32
    %c0_i32_0 = arith.constant 0 : i32
    return %c0_i32, %arg0 : i32, i32
  }
}

</mosaic_0001>

<bundles_post_ra>
// kernel: linear_dqn_forward.1
= control target key start
LH: loop header
LB: loop body
LE: loop exit
PB: predicated region body
PF: predicated region fallthrough
CT: control target
= control target key end

     0   :  { %vm66_vm0 = vcmask 39936   ;;  %s880_s0 = inlined_call_operand.vmem [shape: f32[256,5], index: 0, kind: input, shape index: {}]   ;;  %s881_s1 = inlined_call_operand.vmem [shape: f32[128,5], index: 1, kind: input, shape index: {}]   ;;  %s882_s2 = inlined_call_operand.vmem [shape: f32[2,128], index: 2, kind: input, shape index: {}]   ;;  %s883_s3 = inlined_call_operand.vmem [shape: f32[2,1], index: 3, kind: input, shape index: {}]   ;;  %s884_s4 = inlined_call_operand.hbm [shape: f32[2,256], index: 4, kind: output, shape index: {}]  }
   0x1   :  { %v49_v0 = vld [vmem:[%s880_s0 + $0x78] sm:$0xff]  ;;  %v48_v2 = vld [vmem:[%s880_s0 + $0x70] sm:$0xff]  ;;  %v47_v4 = vld [vmem:[%s880_s0 + $0x68] sm:$0xff] }
   0x2   :  { %v65_v1 = vld [vmem:[%s880_s0 + $0xf8] sm:$0xff]  ;;  %507 = vmatpush.xpose.msk.msra.mxu2 %vm66_vm0, %v49_v0  ;;  %v64_v3 = vld [vmem:[%s880_s0 + $0xf0] sm:$0xff]  ;;  %443 = vmatpush.xpose.msk.msra.mxu0 %vm66_vm0, %v49_v0  ;;  %v63_v5 = vld [vmem:[%s880_s0 + $0xe8] sm:$0xff] }
   0x3   :  { %523 = vmatpush.xpose.msk.msra.mxu3 %vm66_vm0, %v65_v1  ;;  %475 = vmatpush.xpose.msk.msra.mxu1 %vm66_vm0, %v65_v1 }
   0x6   :  { %508 = vmatpush.xpose.msk.msra.mxu2 %vm66_vm0, %v48_v2  ;;  %444 = vmatpush.xpose.msk.msra.mxu0 %vm66_vm0, %v48_v2 }
   0x7   :  { %524 = vmatpush.xpose.msk.msra.mxu3 %vm66_vm0, %v64_v3  ;;  %476 = vmatpush.xpose.msk.msra.mxu1 %vm66_vm0, %v64_v3 }
   0x8   :  { %9 = vsyncpa [#allocation3], 0  ;;  %v46_v6 = vld [vmem:[%s880_s0 + $0x60] sm:$0xff]  ;;  %v45_v8 = vld [vmem:[%s880_s0 + $0x58] sm:$0xff]  ;;  %s434_s10 = sshll.u32 %s884_s4, 4  ;;  %vm423_vm1 = vcmask 1041408   ;;  %s435_s10 = int_to_ptr.hbm [resolvable:$true] %s434_s10 }
   0x9   :  { %v62_v7 = vld [vmem:[%s880_s0 + $0xe0] sm:$0xff]  ;;  %v61_v9 = vld [vmem:[%s880_s0 + $0xd8] sm:$0xff]  ;;  %v44_v10 = vld [vmem:[%s880_s0 + $0x50] sm:$0xff] }
   0xa   :  { %509 = vmatpush.xpose.msk.msra.mxu2 %vm66_vm0, %v47_v4  ;;  %445 = vmatpush.xpose.msk.msra.mxu0 %vm66_vm0, %v47_v4  ;;  %v60_v11 = vld [vmem:[%s880_s0 + $0xd0] sm:$0xff]  ;;  %v43_v12 = vld [vmem:[%s880_s0 + $0x48] sm:$0xff]  ;;  %v42_v14 = vld [vmem:[%s880_s0 + $0x40] sm:$0xff] }
   0xb   :  { %525 = vmatpush.xpose.msk.msra.mxu3 %vm66_vm0, %v63_v5  ;;  %477 = vmatpush.xpose.msk.msra.mxu1 %vm66_vm0, %v63_v5  ;;  %v59_v13 = vld [vmem:[%s880_s0 + $0xc8] sm:$0xff]  ;;  %v58_v15 = vld [vmem:[%s880_s0 + $0xc0] sm:$0xff]  ;;  %v41_v16 = vld [vmem:[%s880_s0 + $0x38] sm:$0xff] }
   0xc   :  { %v57_v17 = vld [vmem:[%s880_s0 + $0xb8] sm:$0xff]  ;;  %v40_v18 = vld [vmem:[%s880_s0 + $0x30] sm:$0xff]  ;;  %v39_v20 = vld [vmem:[%s880_s0 + $0x28] sm:$0xff] }
   0xd   :  { %v56_v19 = vld [vmem:[%s880_s0 + $0xb0] sm:$0xff]  ;;  %v55_v21 = vld [vmem:[%s880_s0 + $0xa8] sm:$0xff]  ;;  %v38_v22 = vld [vmem:[%s880_s0 + $0x20] sm:$0xff] }
   0xe   :  { %510 = vmatpush.xpose.msk.msra.mxu2 %vm66_vm0, %v46_v6  ;;  %446 = vmatpush.xpose.msk.msra.mxu0 %vm66_vm0, %v46_v6  ;;  %v54_v23 = vld [vmem:[%s880_s0 + $0xa0] sm:$0xff]  ;;  %v37_v24 = vld [vmem:[%s880_s0 + $0x18] sm:$0xff]  ;;  %v36_v26 = vld [vmem:[%s880_s0 + $0x10] sm:$0xff] }
   0xf   :  { %526 = vmatpush.xpose.msk.msra.mxu3 %vm66_vm0, %v62_v7  ;;  %478 = vmatpush.xpose.msk.msra.mxu1 %vm66_vm0, %v62_v7  ;;  %v53_v25 = vld [vmem:[%s880_s0 + $0x98] sm:$0xff]  ;;  %v52_v27 = vld [vmem:[%s880_s0 + $0x90] sm:$0xff]  ;;  %v35_v28 = vld [vmem:[%s880_s0 + $0x8] sm:$0xff] }
  0x10   :  { %v51_v29 = vld [vmem:[%s880_s0 + $0x88] sm:$0xff]  ;;  %v34_v30 = vld [vmem:[%s880_s0] sm:$0xff]  ;;  %v28_v35 = vld [vmem:[%s881_s1 + $0x50] sm:$0xff] }
  0x11   :  { %v50_v31 = vld [vmem:[%s880_s0 + $0x80] sm:$0xff]  ;;  %v27_v33 = vld [vmem:[%s881_s1 + $0x48] sm:$0xff]  ;;  %v29_v37 = vld [vmem:[%s881_s1 + $0x58] sm:$0xff] }
  0x12   :  { %511 = vmatpush.xpose.msk.msra.mxu2 %vm66_vm0, %v45_v8  ;;  %447 = vmatpush.xpose.msk.msra.mxu0 %vm66_vm0, %v45_v8  ;;  %v26_v32 = vld [vmem:[%s881_s1 + $0x40] sm:$0xff]  ;;  %v19_v36 = vld [vmem:[%s881_s1 + $0x8] sm:$0xff]  ;;  %v20_v38 = vld [vmem:[%s881_s1 + $0x10] sm:$0xff] }
  0x13   :  { %527 = vmatpush.xpose.msk.msra.mxu3 %vm66_vm0, %v61_v9  ;;  %479 = vmatpush.xpose.msk.msra.mxu1 %vm66_vm0, %v61_v9  ;;  %v18_v34 = vld [vmem:[%s881_s1] sm:$0xff]  ;;  %v21_v40 = vld [vmem:[%s881_s1 + $0x18] sm:$0xff]  ;;  %v31_v41 = vld [vmem:[%s881_s1 + $0x68] sm:$0xff] }
  0x14   :  { %v30_v39 = vld [vmem:[%s881_s1 + $0x60] sm:$0xff]  ;;  %v32_v43 = vld [vmem:[%s881_s1 + $0x70] sm:$0xff]  ;;  %v23_v44 = vld [vmem:[%s881_s1 + $0x28] sm:$0xff] }
  0x15   :  { %v22_v42 = vld [vmem:[%s881_s1 + $0x20] sm:$0xff]  ;;  %v33_v45 = vld [vmem:[%s881_s1 + $0x78] sm:$0xff]  ;;  %v24_v46 = vld [vmem:[%s881_s1 + $0x30] sm:$0xff] }
  0x16   :  { %512 = vmatpush.xpose.msk.msra.mxu2 %vm66_vm0, %v44_v10  ;;  %448 = vmatpush.xpose.msk.msra.mxu0 %vm66_vm0, %v44_v10  ;;  %v25_v47 = vld [vmem:[%s881_s1 + $0x38] sm:$0xff] }
  0x17   :  { %528 = vmatpush.xpose.msk.msra.mxu3 %vm66_vm0, %v60_v11  ;;  %480 = vmatpush.xpose.msk.msra.mxu1 %vm66_vm0, %v60_v11 }
  0x1a   :  { %513 = vmatpush.xpose.msk.msra.mxu2 %vm66_vm0, %v43_v12  ;;  %449 = vmatpush.xpose.msk.msra.mxu0 %vm66_vm0, %v43_v12 }
  0x1b   :  { %529 = vmatpush.xpose.msk.msra.mxu3 %vm66_vm0, %v59_v13  ;;  %481 = vmatpush.xpose.msk.msra.mxu1 %vm66_vm0, %v59_v13 }
  0x1e   :  { %514 = vmatpush.xpose.msk.msra.mxu2 %vm66_vm0, %v42_v14  ;;  %450 = vmatpush.xpose.msk.msra.mxu0 %vm66_vm0, %v42_v14 }
  0x1f   :  { %530 = vmatpush.xpose.msk.msra.mxu3 %vm66_vm0, %v58_v15  ;;  %482 = vmatpush.xpose.msk.msra.mxu1 %vm66_vm0, %v58_v15 }
  0x22   :  { %515 = vmatpush.xpose.msk.msra.mxu2 %vm66_vm0, %v41_v16  ;;  %451 = vmatpush.xpose.msk.msra.mxu0 %vm66_vm0, %v41_v16 }
  0x23   :  { %531 = vmatpush.xpose.msk.msra.mxu3 %vm66_vm0, %v57_v17  ;;  %483 = vmatpush.xpose.msk.msra.mxu1 %vm66_vm0, %v57_v17 }
  0x26   :  { %516 = vmatpush.xpose.msk.msra.mxu2 %vm66_vm0, %v40_v18  ;;  %452 = vmatpush.xpose.msk.msra.mxu0 %vm66_vm0, %v40_v18 }
  0x27   :  { %532 = vmatpush.xpose.msk.msra.mxu3 %vm66_vm0, %v56_v19  ;;  %484 = vmatpush.xpose.msk.msra.mxu1 %vm66_vm0, %v56_v19 }
  0x2a   :  { %517 = vmatpush.xpose.msk.msra.mxu2 %vm66_vm0, %v39_v20  ;;  %453 = vmatpush.xpose.msk.msra.mxu0 %vm66_vm0, %v39_v20 }
  0x2b   :  { %533 = vmatpush.xpose.msk.msra.mxu3 %vm66_vm0, %v55_v21  ;;  %485 = vmatpush.xpose.msk.msra.mxu1 %vm66_vm0, %v55_v21 }
  0x2e   :  { %518 = vmatpush.xpose.msk.msra.mxu2 %vm66_vm0, %v38_v22  ;;  %454 = vmatpush.xpose.msk.msra.mxu0 %vm66_vm0, %v38_v22 }
  0x2f   :  { %534 = vmatpush.xpose.msk.msra.mxu3 %vm66_vm0, %v54_v23  ;;  %486 = vmatpush.xpose.msk.msra.mxu1 %vm66_vm0, %v54_v23  ;;  %v374_v23 = vld [vmem:[%s883_s3] sm:$0x3] }
  0x32   :  { %519 = vmatpush.xpose.msk.msra.mxu2 %vm66_vm0, %v37_v24  ;;  %455 = vmatpush.xpose.msk.msra.mxu0 %vm66_vm0, %v37_v24  ;;  %v568_v24 = vmov 0  }
  0x33   :  { %535 = vmatpush.xpose.msk.msra.mxu3 %vm66_vm0, %v53_v25  ;;  %487 = vmatpush.xpose.msk.msra.mxu1 %vm66_vm0, %v53_v25 }
  0x34   :  { %541 = vset.pattern.permute.xlu0 %v568_v24 }
  0x35   :  { %377 = vperm.xlu0 %541, %v374_v23  }
  0x36   :  { %520 = vmatpush.xpose.msk.msra.mxu2 %vm66_vm0, %v36_v26  ;;  %456 = vmatpush.xpose.msk.msra.mxu0 %vm66_vm0, %v36_v26 }
  0x37   :  { %536 = vmatpush.xpose.msk.msra.mxu3 %vm66_vm0, %v52_v27  ;;  %488 = vmatpush.xpose.msk.msra.mxu1 %vm66_vm0, %v52_v27 }
  0x3a   :  { %521 = vmatpush.xpose.msk.msra.mxu2 %vm66_vm0, %v35_v28  ;;  %457 = vmatpush.xpose.msk.msra.mxu0 %vm66_vm0, %v35_v28 }
  0x3b   :  { %537 = vmatpush.xpose.msk.msra.mxu3 %vm66_vm0, %v51_v29  ;;  %489 = vmatpush.xpose.msk.msra.mxu1 %vm66_vm0, %v51_v29 }
  0x3e   :  { %522 = vmatpush.xpose.msk.msra.mxu2 %vm66_vm0, %v34_v30  ;;  %458 = vmatpush.xpose.msk.msra.mxu0 %vm66_vm0, %v34_v30 }
  0x3f   :  { %538 = vmatpush.xpose.msk.msra.mxu3 %vm66_vm0, %v50_v31  ;;  %490 = vmatpush.xpose.msk.msra.mxu1 %vm66_vm0, %v50_v31 }
  0x41   :  { %467 = vmatmul.msk.f32.vlgmr.msra.gmra.mxu2 %vm66_vm0, %v26_v32  ;;  %459 = vmatmul.msk.f32.vlgmr.msra.gmra.mxu0 %vm66_vm0, %v18_v34 }
  0x42   :  { %500 = vmatmul.msk.f32.vlgmr.msra.gmra.mxu3 %vm66_vm0, %v27_v33  ;;  %491 = vmatmul.msk.f32.vlgmr.msra.gmra.mxu1 %vm66_vm0, %v18_v34 }
  0x49   :  { %468 = vmatmul.msk.f32.gmra.mxu2 %vm66_vm0, %v27_v33  ;;  %460 = vmatmul.msk.f32.gmra.mxu0 %vm66_vm0, %v19_v36 }
  0x4a   :  { %501 = vmatmul.msk.f32.gmra.mxu3 %vm66_vm0, %v28_v35  ;;  %492 = vmatmul.msk.f32.gmra.mxu1 %vm66_vm0, %v19_v36 }
  0x51   :  { %469 = vmatmul.msk.f32.gmra.mxu2 %vm66_vm0, %v28_v35  ;;  %461 = vmatmul.msk.f32.gmra.mxu0 %vm66_vm0, %v20_v38 }
  0x52   :  { %502 = vmatmul.msk.f32.gmra.mxu3 %vm66_vm0, %v29_v37  ;;  %493 = vmatmul.msk.f32.gmra.mxu1 %vm66_vm0, %v20_v38 }
  0x59   :  { %470 = vmatmul.msk.f32.gmra.mxu2 %vm66_vm0, %v29_v37  ;;  %462 = vmatmul.msk.f32.gmra.mxu0 %vm66_vm0, %v21_v40 }
  0x5a   :  { %503 = vmatmul.msk.f32.gmra.mxu3 %vm66_vm0, %v30_v39  ;;  %494 = vmatmul.msk.f32.gmra.mxu1 %vm66_vm0, %v21_v40 }
  0x61   :  { %471 = vmatmul.msk.f32.gmra.mxu2 %vm66_vm0, %v30_v39  ;;  %463 = vmatmul.msk.f32.gmra.mxu0 %vm66_vm0, %v22_v42 }
  0x62   :  { %504 = vmatmul.msk.f32.gmra.mxu3 %vm66_vm0, %v31_v41  ;;  %495 = vmatmul.msk.f32.gmra.mxu1 %vm66_vm0, %v22_v42 }
  0x69   :  { %472 = vmatmul.msk.f32.gmra.mxu2 %vm66_vm0, %v31_v41  ;;  %464 = vmatmul.msk.f32.gmra.mxu0 %vm66_vm0, %v23_v44 }
  0x6a   :  { %505 = vmatmul.msk.f32.gmra.mxu3 %vm66_vm0, %v32_v43  ;;  %496 = vmatmul.msk.f32.gmra.mxu1 %vm66_vm0, %v23_v44 }
  0x71   :  { %473 = vmatmul.msk.f32.gmra.mxu2 %vm66_vm0, %v32_v43  ;;  %465 = vmatmul.msk.f32.gmra.mxu0 %vm66_vm0, %v24_v46 }
  0x72   :  { %506 = vmatmul.msk.f32.gmra.mxu3 %vm66_vm0, %v33_v45  ;;  %497 = vmatmul.msk.f32.gmra.mxu1 %vm66_vm0, %v24_v46  ;;  %v373_v46 = vld [vmem:[%s882_s2] sm:$0x3]  ;;  %s569_s2 = smov [#allocation2]  }
  0x73   :  { %s432_s7 = sshll.u32 %s569_s2, 4  ;;  %s433_s7 = int_to_ptr.vmem [resolvable:$true] %s432_s7 }
  0x79   :  { %474 = vmatmul.msk.f32.gmra.mxu2 %vm66_vm0, %v33_v45  ;;  %466 = vmatmul.msk.f32.gmra.mxu0 %vm66_vm0, %v25_v47 }
  0x7a   :  { %498 = vmatmul.msk.f32.gmra.mxu1 %vm66_vm0, %v25_v47 }
  0x82   :  { %499 = vmatmul.msk.f32.gmra.mxu1 %vm66_vm0, %v26_v32 }
  0xbe   :  { %v837_v49 = vpop.f32.mrf.mxu0 }
  0xbf   :  { %v835_v48 = vpop.f32.mrf.mxu1 }
  0xc0   :  { %v342_v44 = vmax.f32 %v835_v48, 0.0  ;;  %v341_v48 = vmax.f32 %v837_v49, 0.0 }
  0xc4   :  { %v839_v50 = vpop.f32.mrf.mxu2 }
  0xc5   :  { %v320_v51 = vpop.f32.mrf.mxu3  ;;  %v357_v36 = vmax.f32 %v839_v50, 0.0 }
  0xc6   :  { %v843_v53 = vpop.f32.mrf.mxu0  ;;  %v360_v25 = vmax.f32 %v320_v51, 0.0 }
  0xc7   :  { %v841_v52 = vpop.f32.mrf.mxu1  ;;  %v343_v51 = vmax.f32 %v843_v53, 0.0 }
  0xc8   :  { %v344_v42 = vmax.f32 %v841_v52, 0.0  ;;  %v378_v52 = vpop.permute.xlu0 %377 }
  0xcc   :  { %v845_v54 = vpop.f32.mrf.mxu2 }
  0xcd   :  { %v323_v55 = vpop.f32.mrf.mxu3  ;;  %v359_v34 = vmax.f32 %v845_v54, 0.0 }
  0xce   :  { %v849_v59 = vpop.f32.mrf.mxu0  ;;  %v362_v20 = vmax.f32 %v323_v55, 0.0 }
  0xcf   :  { %v847_v56 = vpop.f32.mrf.mxu1  ;;  %v345_v50 = vmax.f32 %v849_v59, 0.0 }
  0xd0   :  { %v346_v40 = vmax.f32 %v847_v56, 0.0 }
  0xd4   :  { %v258_v57 = vpop.f32.mrf.mxu2 }
  0xd5   :  { %v326_v58 = vpop.f32.mrf.mxu3  ;;  %v361_v31 = vmax.f32 %v258_v57, 0.0 }
  0xd6   :  { %v853_v0 = vpop.f32.mrf.mxu0  ;;  %v364_v17 = vmax.f32 %v326_v58, 0.0 }
  0xd7   :  { %v851_v60 = vpop.f32.mrf.mxu1  ;;  %v347_v47 = vmax.f32 %v853_v0, 0.0 }
  0xd8   :  { %v348_v39 = vmax.f32 %v851_v60, 0.0 }
  0xdc   :  { %v261_v61 = vpop.f32.mrf.mxu2 }
  0xdd   :  { %v329_v62 = vpop.f32.mrf.mxu3  ;;  %v363_v29 = vmax.f32 %v261_v61, 0.0 }
  0xde   :  { %v855_v4 = vpop.f32.mrf.mxu0  ;;  %v366_v15 = vmax.f32 %v329_v62, 0.0 }
  0xdf   :  { %v305_v63 = vpop.f32.mrf.mxu1  ;;  %v349_v45 = vmax.f32 %v855_v4, 0.0 }
  0xe0   :  { %v350_v37 = vmax.f32 %v305_v63, 0.0 }
  0xe4   :  { %v264_v1 = vpop.f32.mrf.mxu2 }
  0xe5   :  { %v332_v2 = vpop.f32.mrf.mxu3  ;;  %v365_v28 = vmax.f32 %v264_v1, 0.0 }
  0xe6   :  { %v857_v8 = vpop.f32.mrf.mxu0  ;;  %v368_v14 = vmax.f32 %v332_v2, 0.0 }
  0xe7   :  { %v308_v3 = vpop.f32.mrf.mxu1  ;;  %v351_v43 = vmax.f32 %v857_v8, 0.0 }
  0xe8   :  { %v352_v35 = vmax.f32 %v308_v3, 0.0 }
  0xec   :  { %v267_v5 = vpop.f32.mrf.mxu2 }
  0xed   :  { %v335_v6 = vpop.f32.mrf.mxu3  ;;  %v367_v26 = vmax.f32 %v267_v5, 0.0 }
  0xee   :  { %v370_v12 = vmax.f32 %v335_v6, 0.0  ;;  %v246_v19 = vpop.f32.mrf.mxu0 }
  0xef   :  { %v311_v7 = vpop.f32.mrf.mxu1  ;;  %v353_v41 = vmax.f32 %v246_v19, 0.0 }
  0xf0   :  { %v354_v32 = vmax.f32 %v311_v7, 0.0 }
  0xf4   :  { %v270_v9 = vpop.f32.mrf.mxu2 }
  0xf5   :  { %v338_v10 = vpop.f32.mrf.mxu3  ;;  %v369_v21 = vmax.f32 %v270_v9, 0.0 }
  0xf6   :  { %v372_v11 = vmax.f32 %v338_v10, 0.0  ;;  %v249_v33 = vpop.f32.mrf.mxu0 }
  0xf7   :  { %v314_v13 = vpop.f32.mrf.mxu1  ;;  %v355_v38 = vmax.f32 %v249_v33, 0.0 }
  0xf8   :  { %400 = vmatpush.msrb.mxu3 %v372_v11  ;;  %v356_v30 = vmax.f32 %v314_v13, 0.0 }
  0xfa   :  { %401 = vmatpush.msrb.mxu3 %v370_v12 }
  0xfc   :  { %402 = vmatpush.msrb.mxu3 %v368_v14  ;;  %v273_v16 = vpop.f32.mrf.mxu2 }
  0xfd   :  { %v371_v18 = vmax.f32 %v273_v16, 0.0 }
  0xfe   :  { %403 = vmatpush.msrb.mxu3 %v366_v15 }
  0xff   :  { %380 = vmatpush.msrb.mxu2 %v371_v18  ;;  %v317_v22 = vpop.f32.mrf.mxu1 }
 0x100   :  { %404 = vmatpush.msrb.mxu3 %v364_v17  ;;  %v358_v27 = vmax.f32 %v317_v22, 0.0 }
 0x101   :  { %381 = vmatpush.msrb.mxu2 %v369_v21 }
 0x102   :  { %405 = vmatpush.msrb.mxu3 %v362_v20 }
 0x103   :  { %382 = vmatpush.msrb.mxu2 %v367_v26 }
 0x104   :  { %406 = vmatpush.msrb.mxu3 %v360_v25 }
 0x105   :  { %383 = vmatpush.msrb.mxu2 %v365_v28 }
 0x106   :  { %407 = vmatpush.msrb.mxu3 %v358_v27 }
 0x107   :  { %384 = vmatpush.msrb.mxu2 %v363_v29 }
 0x108   :  { %408 = vmatpush.msrb.mxu3 %v356_v30 }
 0x109   :  { %385 = vmatpush.msrb.mxu2 %v361_v31 }
 0x10a   :  { %409 = vmatpush.msrb.mxu3 %v354_v32 }
 0x10b   :  { %386 = vmatpush.msrb.mxu2 %v359_v34 }
 0x10c   :  { %410 = vmatpush.msrb.mxu3 %v352_v35 }
 0x10d   :  { %387 = vmatpush.msrb.mxu2 %v357_v36 }
 0x10e   :  { %411 = vmatpush.msrb.mxu3 %v350_v37 }
 0x10f   :  { %388 = vmatpush.msrb.mxu2 %v355_v38 }
 0x110   :  { %412 = vmatpush.msrb.mxu3 %v348_v39 }
 0x111   :  { %389 = vmatpush.msrb.mxu2 %v353_v41 }
 0x112   :  { %413 = vmatpush.msrb.mxu3 %v346_v40 }
 0x113   :  { %390 = vmatpush.msrb.mxu2 %v351_v43 }
 0x114   :  { %414 = vmatpush.msrb.mxu3 %v344_v42 }
 0x115   :  { %391 = vmatpush.msrb.mxu2 %v349_v45 }
 0x116   :  { %415 = vmatpush.msrb.mxu3 %v342_v44 }
 0x117   :  { %416 = vmatmul.f32.vlgmr.msrb.gmra.mxu3 %v373_v46  ;;  %392 = vmatpush.msrb.mxu2 %v347_v47 }
 0x119   :  { %393 = vmatpush.msrb.mxu2 %v345_v50 }
 0x11b   :  { %394 = vmatpush.msrb.mxu2 %v343_v51 }
 0x11d   :  { %395 = vmatpush.msrb.mxu2 %v341_v48 }
 0x11e   :  { %396 = vmatmul.f32.vlgmr.msrb.gmra.mxu2 %v373_v46 }
 0x19a   :  { %v417_v54 = vpop.f32.mrf.mxu3 }
 0x19b   :  { %v418_v55 = vadd.f32 %v417_v54, %v378_v52 }
 0x19d   :  { %v422_v56 = vrot.slane %v418_v55, 6 }
 0x1a1   :  { %v397_v57 = vpop.f32.mrf.mxu2 }
 0x1a2   :  { %v398_v58 = vadd.f32 %v397_v57, %v378_v52 }
 0x1a4   :  { %v424_v53 = vsel %vm423_vm1, %v398_v58, %v422_v56 }
 0x1a5   :  { %426 = vst [vmem:[#allocation2] sm:$0xf] %v424_v53 }
 0x1a6   :  { %437 = dma.vmem_to_hbm [thread:$0]  %s433_s7, 64, %s435_s10, [#allocation3]  }
 0x1a7   :  { %566 = dma.done.wait [#allocation3], 64  }
 0x1a8   :  { %567 = vsyncadd [#allocation3], 4294967232 }
 0x1a9   :  { %442 = vsyncpa [#allocation3], 1 }

</bundles_post_ra>
